<compile_context>
chip_gen: v5e
topology: v5e:2x2
jax: 0.10.0
libtpu: 0.0.40
codegen_flags: <defaults>
</compile_context>

<pallas_src>
import functools
import math

import jax
import jax.numpy as jnp
from jax.experimental import pallas as pl
from jax.experimental.pallas import tpu as pltpu


# ----------------------------- activation bodies -----------------------------

def _relu(x):
    return jnp.maximum(x, 0.0)


def _relu6(x):
    return jnp.clip(x, 0.0, 6.0)


def _swish(x):
    # x * sigmoid(x), sigmoid = 1 / (1 + exp(-x)).
    # exp -> EUP, approx reciprocal -> EUP (vrcp): keeps the VALU slot free.
    return x * pl.reciprocal(1.0 + jnp.exp(-x), approx=True)


def _hswish(x):
    return x * jnp.clip(x + 3.0, 0.0, 6.0) * (1.0 / 6.0)


def _hard_sigmoid(x):
    return jnp.clip(0.2 * x + 0.5, 0.0, 1.0)


_ACTIVATIONS = {
    "relu": _relu,
    "relu6": _relu6,
    "swish": _swish,
    "hswish": _hswish,
    "hard_sigmoid": _hard_sigmoid,
}


# --------------------------------- kernel ------------------------------------

def _act_kernel(x_ref, o_ref, *, act_fn):
    # x_ref / o_ref: (TM, COLS) lane-dense VMEM tiles. Pure VPU/EUP elementwise.
    x = x_ref[...]
    o_ref[...] = act_fn(x).astype(o_ref.dtype)


# --------------------------------- tiling ------------------------------------

def _pick_tiling(total, itemsize):
    """Return (cols, rows, tm). cols is lane-dense (multiple of 128)."""
    # Packed-sublane granularity per dtype width: f32->8, bf16->16, int8/fp8->32.
    sub = {4: 8, 2: 16, 1: 32}.get(itemsize, 8)

    # Prefer a multiple-of-128 column count that divides `total` exactly
    # (no padding at all); fall back to 128 with a small tail pad.
    cols = None
    for c in (2048, 1024, 512, 256, 128):
        if total % c == 0 and total // c >= sub:
            cols = c
            break
    if cols is None:
        cols = 128  # pad only the <= 127-element tail in the wrapper

    rows = pl.cdiv(total, cols)

    # ~4 MiB tiles; in+out double-buffered => ~4x tile (~16 MiB) footprint,
    # well under the 32 MiB vmem_limit we request below on all of v5e/v6e/v7x.
    target_tile_bytes = 4 * 1024 * 1024
    tm = max(sub, (target_tile_bytes // (cols * itemsize)) // sub * sub)

    # Keep at least 2 row-blocks when there is enough work so the "parallel"
    # grid axis can be split across v7x's two TensorCores.
    if rows >= 2 * sub:
        half = ((pl.cdiv(rows, 2) + sub - 1) // sub) * sub
        tm = min(tm, half)

    if tm >= rows:
        tm = rows  # single block covering the full first dim (legal: full-dim block)

    return cols, rows, tm


# --------------------------------- wrapper -----------------------------------

def activation(x, act_name: str, *, donate: bool = False):
    """Apply the named activation elementwise to x (any shape)."""
    if act_name not in _ACTIVATIONS:
        raise NotImplementedError(act_name)
    act_fn = _ACTIVATIONS[act_name]

    orig_shape = x.shape
    dtype = x.dtype
    total = math.prod(orig_shape)
    itemsize = jnp.dtype(dtype).itemsize

    cols, rows, tm = _pick_tiling(total, itemsize)
    padded_total = rows * cols

    if padded_total == total:
        x2d = x.reshape(rows, cols)                       # no padding pass
    else:
        flat = x.reshape(-1)
        flat = jnp.pad(flat, (0, padded_total - total))   # <= cols-1 tail only
        x2d = flat.reshape(rows, cols)

    grid = (pl.cdiv(rows, tm),)

    out2d = pl.pallas_call(
        functools.partial(_act_kernel, act_fn=act_fn),
        out_shape=jax.ShapeDtypeStruct((rows, cols), dtype),
        grid_spec=pltpu.PrefetchScalarGridSpec(
            num_scalar_prefetch=0,
            grid=grid,
            in_specs=[pl.BlockSpec((tm, cols), lambda i: (i, 0))],
            out_specs=pl.BlockSpec((tm, cols), lambda i: (i, 0)),
        ),
        compiler_params=pltpu.CompilerParams(
            dimension_semantics=("parallel",),
            vmem_limit_bytes=32 * 1024 * 1024,
        ),
        input_output_aliases=({0: 0} if donate else {}),
    )(x2d)

    if padded_total == total:
        return out2d.reshape(orig_shape)
    return out2d.reshape(-1)[:total].reshape(orig_shape)


# ---------------------------------- main -------------------------------------

if __name__ == "__main__":
    k0, k1, k2 = jax.random.split(jax.random.PRNGKey(0), 3)

    # Plain-JAX references matching the PyTorch definitions.
    refs = {
        "relu": lambda v: jnp.maximum(v, 0.0),
        "relu6": lambda v: jnp.clip(v, 0.0, 6.0),
        "swish": lambda v: v * jax.nn.sigmoid(v),
        "hswish": lambda v: v * jnp.clip(v + 3.0, 0.0, 6.0) / 6.0,
        "hard_sigmoid": lambda v: jnp.clip(0.2 * v + 0.5, 0.0, 1.0),
    }

    # 1) Spec shape (NCHW 2x4x16x16, f32): total=2048 is a multiple of 128, so
    #    the no-padding fast path is taken. All five activations.
    x = jax.random.normal(k0, (2, 4, 16, 16), dtype=jnp.float32) * 3.0
    for name in ("relu", "relu6", "swish", "hswish", "hard_sigmoid"):
        out = jax.block_until_ready(activation(x, name))
        ref = refs[name](x)
        assert out.shape == x.shape and out.dtype == x.dtype
        if name == "swish":
            # approx EUP reciprocal -> slightly looser tolerance
            assert jnp.allclose(out, ref, atol=2e-2, rtol=2e-2), f"mismatch: {name}"
        else:
            assert jnp.allclose(out, ref, atol=1e-5, rtol=1e-5), f"mismatch: {name}"

    # 2) Awkward element count (exercises the small tail-pad fallback and a
    #    multi-block grid).
    x2 = jax.random.normal(k1, (2, 3, 17, 19), dtype=jnp.float32) * 3.0
    out2 = jax.block_until_ready(activation(x2, "hswish"))
    assert jnp.allclose(out2, refs["hswish"](x2), atol=1e-5, rtol=1e-5), "mismatch: hswish ragged"

    # 3) bf16 (exercises dtype-aware packed-sublane tiling: tm multiple of 16).
    xb = (jax.random.normal(k2, (2, 4, 16, 16), dtype=jnp.float32) * 3.0).astype(jnp.bfloat16)
    outb = jax.block_until_ready(activation(xb, "relu6"))
    refb = refs["relu6"](xb.astype(jnp.float32))
    assert outb.dtype == jnp.bfloat16
    assert jnp.allclose(outb.astype(jnp.float32), refb, atol=2e-2, rtol=2e-2), "mismatch: relu6 bf16"

    print("KERNEL_OK")
</pallas_src>

<mosaic_0001>
module attributes {stable_mosaic.version = 11 : i64} {
  func.func @_act_kernel(%arg0: i32, %arg1: memref<8x256xf32, #tpu.memory_space<vmem>>, %arg2: memref<8x256xf32, #tpu.memory_space<vmem>>) attributes {dimension_semantics = [#tpu.dimension_semantics<parallel>], iteration_bounds = array<i64: 1>, scalar_prefetch = 0 : i64, scratch_operands = 0 : i64, tpu.core_type = #tpu.core_type<tc>, window_params = [{transform_indices = @transform_0, window_bounds = array<i64: 8, 256>}, {transform_indices = @transform_1, window_bounds = array<i64: 8, 256>}]} {
    %c0 = arith.constant 0 : index
    %c0_0 = arith.constant 0 : index
    %0 = vector.load %arg1[%c0, %c0_0] : memref<8x256xf32, #tpu.memory_space<vmem>>, vector<8x256xf32>
    %cst = arith.constant 0.000000e+00 : f32
    %1 = vector.broadcast %cst : f32 to vector<8x256xf32>
    %2 = arith.maximumf %0, %1 : vector<8x256xf32>
    %c0_1 = arith.constant 0 : index
    %c0_2 = arith.constant 0 : index
    %3 = vector.load %arg2[%c0_1, %c0_2] : memref<8x256xf32, #tpu.memory_space<vmem>>, vector<8x256xf32>
    tpu.vector_store %arg2[%c0_1, %c0_2], %2 {strides = array<i32>} : memref<8x256xf32, #tpu.memory_space<vmem>>, vector<8x256xf32>,
    return
  }
  func.func @transform_0(%arg0: i32) -> (i32, i32) {
    %c0_i32 = arith.constant 0 : i32
    %c0_i32_0 = arith.constant 0 : i32
    return %arg0, %c0_i32 : i32, i32
  }
  func.func @transform_1(%arg0: i32) -> (i32, i32) {
    %c0_i32 = arith.constant 0 : i32
    %c0_i32_0 = arith.constant 0 : i32
    return %arg0, %c0_i32 : i32, i32
  }
}

</mosaic_0001>

<bundles_post_ra>
// kernel: tpu_custom_call.1
= control target key start
LH: loop header
LB: loop body
LE: loop exit
PB: predicated region body
PF: predicated region fallthrough
CT: control target
= control target key end

     0   :  { %6 = vsyncpa [#allocation3], 0  ;;  %s118_s0 = inlined_call_operand.hbm [shape: f32[8,256], index: 0, kind: input, shape index: {}]   ;;  %s119_s1 = inlined_call_operand.hbm [shape: f32[8,256], index: 1, kind: output, shape index: {}]  }
   0x1   :  { %7 = vsyncpa [#allocation4], 0  ;;  %s13_s8 = sshll.u32 %s118_s0, 4  ;;  %s100_s9 = smov [#allocation2]   ;;  %s14_s8 = int_to_ptr.hbm [resolvable:$true] %s13_s8 }
   0x2   :  { %s15_s10 = sshll.u32 %s100_s9, 4  ;;  %s16_s10 = int_to_ptr.vmem [resolvable:$true] %s15_s10 }
   0x3   :  { %18 = dma.hbm_to_vmem [thread:$0]  %s14_s8, 256, %s16_s10, [#allocation3]  }
   0x4   :  { %96 = dma.done.wait [#allocation3], 256  }
   0x5   :  { %97 = vsyncadd [#allocation3], 4294967040  ;;  %s101_s11 = smov [#allocation5]   ;;  %s36_s15 = sshll.u32 %s119_s1, 4  ;;  %v23_v0 = vld [vmem:[#allocation2] sm:$0xff]  ;;  %v24_v1 = vld [vmem:[#allocation2 + $0x8] sm:$0xff]  ;;  %s37_s15 = int_to_ptr.hbm [resolvable:$true] %s36_s15 }
   0x6   :  { %s34_s12 = sshll.u32 %s101_s11, 4  ;;  %v25_v2 = vmax.f32 %v23_v0, 0.0  ;;  %v26_v3 = vmax.f32 %v24_v1, 0.0  ;;  %s35_s12 = int_to_ptr.vmem [resolvable:$true] %s34_s12 }
   0x8   :  { %27 = vst [vmem:[#allocation5] sm:$0xff] %v25_v2 }
   0x9   :  { %28 = vst [vmem:[#allocation5 + $0x8] sm:$0xff] %v26_v3 }
   0xa   :  { %39 = dma.vmem_to_hbm [thread:$0]  %s35_s12, 256, %s37_s15, [#allocation4]  }
   0xb   :  { %98 = dma.done.wait [#allocation4], 256  }
   0xc   :  { %99 = vsyncadd [#allocation4], 4294967040 }
   0xd   :  { %44 = vsyncpa [#allocation3], 1 }
   0xe   :  { %45 = vsyncpa [#allocation4], 1 }

</bundles_post_ra>
